<compile_context>
chip_gen: v5e
topology: v5e:2x2
jax: 0.10.0
libtpu: 0.0.40
codegen_flags: <defaults>
</compile_context>

<pallas_src>
import jax
import jax.numpy as jnp
from jax import lax
from jax.experimental import pallas as pl
from jax.experimental.pallas import tpu as pltpu


# ---------------------------------------------------------------- kernel -----
def _make_kernel(has_bias: bool, aligned: bool, compute_dtype):
    """Kernel over refs: (xe, xo, w_even, w_odd, [bias], out)."""

    def kernel(*refs):
        xe_ref, xo_ref, we_ref, wo_ref = refs[:4]
        b_ref = refs[4] if has_bias else None
        o_ref = refs[-1]

        tr, r2, p = o_ref.shape          # (row-tile, R/2, P)
        tm = tr * r2
        k2 = we_ref.shape[0]             # 2C
        cdt = compute_dtype

        we = we_ref[...]                 # already compute_dtype (prepared once)
        wo = wo_ref[...]
        b = None if b_ref is None else b_ref[...].astype(jnp.float32)

        def project(xe2, xo2):
            acc = jnp.dot(xe2.astype(cdt), we, preferred_element_type=jnp.float32)
            acc = acc + jnp.dot(xo2.astype(cdt), wo,
                                preferred_element_type=jnp.float32)
            return acc if b is None else acc + b

        if aligned:
            # R2 % 8 == 0: collapsing (tr, R2) never crosses a sublane tile
            # boundary -> free reshape, single big MXU call per block.
            acc = project(xe_ref[...].reshape(tm, k2),
                          xo_ref[...].reshape(tm, k2))
            o_ref[...] = acc.reshape(tr, r2, p).astype(o_ref.dtype)
        else:
            # R2 % 8 != 0: a (tr,R2,K2)->(tm,K2) collapse would relayout-copy
            # both operands; do per-row-tile 2D matmuls instead (tr kept small).
            for r in range(tr):
                o_ref[r] = project(xe_ref[r], xo_ref[r]).astype(o_ref.dtype)

    return kernel


# ------------------------------------------------------------ prep (init) ----
def prepare_patch_merge_params(weight, bias=None, *, input_patch_dim,
                               compute_dtype=jnp.bfloat16):
    """Hoisted per-module weight prep. Do once at init, reuse across calls."""
    C = input_patch_dim
    K4, P = weight.shape
    assert K4 == 4 * C, (weight.shape, C)
    w_even = jnp.concatenate([weight[0:C], weight[2 * C:3 * C]],
                             axis=0).astype(compute_dtype)      # (2C, P)
    w_odd = jnp.concatenate([weight[C:2 * C], weight[3 * C:4 * C]],
                            axis=0).astype(compute_dtype)       # (2C, P)
    b2d = None if bias is None else bias.astype(jnp.float32).reshape(1, P)
    return dict(w_even=w_even, w_odd=w_odd, bias=b2d, C=C, P=P,
                compute_dtype=compute_dtype)


# ------------------------------------------------------------ tiling utils ---
def _vmem_cap_bytes():
    """~80% of physical VMEM per core: ~51 MiB on v7x, ~102 MiB on v5e/v6e."""
    phys = 128 << 20
    try:
        info = pltpu.get_tpu_info()
        phys = int(getattr(info, "vmem_capacity_bytes", phys)) or phys
    except Exception:
        pass
    return int(phys * 0.8)


def _pick_row_tile(r2, batch, footprint_fn, vmem_budget, target_tokens, max_tr):
    """Largest divisor tr of r2 that fits VMEM / token target and still leaves
    enough balanced grid steps for megacore (v7x: 2 TensorCores)."""
    divisors = [d for d in range(1, r2 + 1) if r2 % d == 0 and d <= max_tr] or [1]
    fits = [d for d in divisors if footprint_fn(d) <= vmem_budget] or [1]
    pool = [d for d in fits if d * r2 <= target_tokens] or [min(fits)]
    for min_steps in (8, 2, 1):
        cands = [d for d in pool if batch * (r2 // d) >= min_steps]
        if cands:
            return max(cands)
    return min(pool)


# ---------------------------------------------------------------- forward ----
def patch_merge_forward(x, params, *, input_resolution, out_dtype=None,
                        target_block_tokens=None):
    """x: (B, R*R, C); params: from prepare_patch_merge_params."""
    B, num_patches, C = x.shape
    R = input_resolution
    assert num_patches == R * R and R % 2 == 0, (x.shape, R)
    assert C == params["C"], (C, params["C"])
    P = params["P"]
    R2 = R // 2
    K2 = 2 * C
    M = R2 * R2
    out_dtype = jnp.dtype(x.dtype if out_dtype is None else out_dtype)
    has_bias = params["bias"] is not None
    cdt = params["compute_dtype"]

    # Metadata-only view: (B, R*R, C) -> (B, R/2, 2, R/2, 2C).  No HBM copy.
    x5 = x.reshape(B, R2, 2, R2, K2)

    # ---- VMEM- & shape-aware tiling -----------------------------------------
    cap = _vmem_cap_bytes()
    if target_block_tokens is None:
        target_block_tokens = 2048 if cap >= (80 << 20) else 1024

    xb = x.dtype.itemsize
    wb = jnp.dtype(cdt).itemsize
    ob = out_dtype.itemsize

    def footprint(tr):
        tm = tr * R2
        inputs = 2 * 2 * tm * K2 * xb            # xe/xo, double-buffered
        weights = 2 * (2 * K2) * P * wb          # both halves, double-buffered
        outs = 2 * tm * P * ob                   # output, double-buffered
        bias_b = (2 * P * 4) if has_bias else 0
        scratch = 2 * tm * K2 * wb + tm * P * 4  # casted operands + f32 acc
        return inputs + weights + outs + bias_b + scratch

    aligned = (R2 % 8 == 0)
    max_tr = R2 if aligned else min(R2, 16)      # bound per-row unroll
    tr = _pick_row_tile(R2, B, footprint, int(cap * 0.75),
                        target_block_tokens, max_tr)
    grid = (B, R2 // tr)

    # ---- specs ---------------------------------------------------------------
    in_specs = [
        # even source rows -> last dim is [x0 | x2]
        pl.BlockSpec((None, tr, None, R2, K2), lambda b, t: (b, t, 0, 0, 0)),
        # odd source rows  -> last dim is [x1 | x3]
        pl.BlockSpec((None, tr, None, R2, K2), lambda b, t: (b, t, 1, 0, 0)),
        # grid-invariant projection halves (constant index_map -> fetched once)
        pl.BlockSpec((K2, P), lambda b, t: (0, 0)),
        pl.BlockSpec((K2, P), lambda b, t: (0, 0)),
    ]
    args = [x5, x5, params["w_even"], params["w_odd"]]
    if has_bias:
        in_specs.append(pl.BlockSpec((1, P), lambda b, t: (0, 0)))
        args.append(params["bias"])

    kernel = _make_kernel(has_bias=has_bias, aligned=aligned, compute_dtype=cdt)

    vmem_limit = int(min(cap, max(footprint(tr) * 5 // 4 + (2 << 20), 32 << 20)))

    flops = 2 * B * M * (4 * C) * P + (B * M * P if has_bias else 0)
    bytes_accessed = (B * num_patches * C * xb + 4 * C * P * wb
                      + (P * 4 if has_bias else 0) + B * M * P * ob)

    out4 = pl.pallas_call(
        kernel,
        out_shape=jax.ShapeDtypeStruct((B, R2, R2, P), out_dtype),
        grid=grid,
        in_specs=in_specs,
        out_specs=pl.BlockSpec((None, tr, R2, P), lambda b, t: (b, t, 0, 0)),
        compiler_params=pltpu.CompilerParams(
            dimension_semantics=("parallel", "parallel"),
            vmem_limit_bytes=vmem_limit,
        ),
        cost_estimate=pl.CostEstimate(flops=flops, transcendentals=0,
                                      bytes_accessed=bytes_accessed),
    )(*args)

    return out4.reshape(B, M, P)                 # metadata-only reshape


# -------------------------------------------------------------- reference ----
def patch_merge_reference(x, weight, bias, input_resolution):
    B, _, C = x.shape
    R = input_resolution
    xr = x.reshape(B, R, R, C)
    x0 = xr[:, 0::2, 0::2, :]
    x1 = xr[:, 1::2, 0::2, :]
    x2 = xr[:, 0::2, 1::2, :]
    x3 = xr[:, 1::2, 1::2, :]
    merged = jnp.concatenate([x0, x1, x2, x3], -1).reshape(B, -1, 4 * C)
    out = jnp.einsum("bnk,kp->bnp", merged.astype(jnp.float32),
                     weight.astype(jnp.float32),
                     precision=lax.Precision.HIGHEST)
    if bias is not None:
        out = out + bias
    return out


# ------------------------------------------------------------------- demo ----
if __name__ == "__main__":
    key = jax.random.PRNGKey(0)

    # --- Config 1: R=16 (R/2=8, sublane-aligned path), C=32, P=64 ------------
    B, R, C, P = 2, 16, 32, 64
    k1, k2, k3, key = jax.random.split(key, 4)
    x = jax.random.normal(k1, (B, R * R, C), dtype=jnp.float32)
    weight = jax.random.normal(k2, (4 * C, P), dtype=jnp.float32) * 0.02
    bias = jax.random.normal(k3, (P,), dtype=jnp.float32) * 0.02

    # Exact f32 path, no bias (module default use_bias=False).
    params_f32 = prepare_patch_merge_params(weight, None, input_patch_dim=C,
                                            compute_dtype=jnp.float32)
    out_f32 = jax.block_until_ready(
        patch_merge_forward(x, params_f32, input_resolution=R))
    ref = patch_merge_reference(x, weight, None, R)
    assert out_f32.shape == (B, R * R // 4, P)
    assert jnp.allclose(out_f32, ref, atol=2e-3, rtol=2e-3), "f32 mismatch"

    # Fast path: bf16 MXU compute + bf16 I/O, with bias (weight prep hoisted).
    params_bf16 = prepare_patch_merge_params(weight, bias, input_patch_dim=C,
                                             compute_dtype=jnp.bfloat16)
    x_bf16 = x.astype(jnp.bfloat16)
    out_bf16 = jax.block_until_ready(
        patch_merge_forward(x_bf16, params_bf16, input_resolution=R))
    ref_b = patch_merge_reference(x, weight, bias, R)
    assert out_bf16.shape == (B, R * R // 4, P)
    assert out_bf16.dtype == jnp.bfloat16
    assert jnp.allclose(out_bf16.astype(jnp.float32), ref_b,
                        atol=6e-2, rtol=6e-2), "bf16 mismatch"

    # --- Config 2: R=8 (R/2=4, non-8-aligned per-row path), C=96, P=80 -------
    Bb, Rb, Cb, Pb = 2, 8, 96, 80
    k4, k5, key = jax.random.split(key, 3)
    xb_ = jax.random.normal(k4, (Bb, Rb * Rb, Cb), dtype=jnp.float32)
    wb_ = jax.random.normal(k5, (4 * Cb, Pb), dtype=jnp.float32) * 0.02
    params2 = prepare_patch_merge_params(wb_, None, input_patch_dim=Cb,
                                         compute_dtype=jnp.float32)
    out2 = jax.block_until_ready(
        patch_merge_forward(xb_, params2, input_resolution=Rb))
    ref2 = patch_merge_reference(xb_, wb_, None, Rb)
    assert out2.shape == (Bb, Rb * Rb // 4, Pb)
    assert jnp.allclose(out2, ref2, atol=2e-3, rtol=2e-3), "non-aligned mismatch"

    print("KERNEL_OK")
</pallas_src>

<mosaic_0001>
module attributes {stable_mosaic.version = 11 : i64} {
  func.func @kernel(%arg0: i32, %arg1: i32, %arg2: memref<1x2x1x8x64xf32, #tpu.memory_space<vmem>>, %arg3: memref<1x2x1x8x64xf32, #tpu.memory_space<vmem>>, %arg4: memref<64x64xf32, #tpu.memory_space<vmem>>, %arg5: memref<64x64xf32, #tpu.memory_space<vmem>>, %arg6: memref<1x2x8x64xf32, #tpu.memory_space<vmem>>) attributes {dimension_semantics = [#tpu.dimension_semantics<parallel>, #tpu.dimension_semantics<parallel>], iteration_bounds = array<i64: 2, 4>, scalar_prefetch = 0 : i64, scratch_operands = 0 : i64, tpu.core_type = #tpu.core_type<tc>, window_params = [{transform_indices = @transform_0, window_bounds = array<i64: 1, 2, 1, 8, 64>}, {transform_indices = @transform_1, window_bounds = array<i64: 1, 2, 1, 8, 64>}, {pipeline_mode = #tpu.pipeline_mode<synchronous>, transform_indices = @transform_2, window_bounds = array<i64: 64, 64>}, {pipeline_mode = #tpu.pipeline_mode<synchronous>, transform_indices = @transform_3, window_bounds = array<i64: 64, 64>}, {transform_indices = @transform_4, window_bounds = array<i64: 1, 2, 8, 64>}]} {
    %c0 = arith.constant 0 : index
    %c0_0 = arith.constant 0 : index
    %0 = vector.load %arg4[%c0, %c0_0] : memref<64x64xf32, #tpu.memory_space<vmem>>, vector<64x64xf32>
    %c0_1 = arith.constant 0 : index
    %c0_2 = arith.constant 0 : index
    %1 = vector.load %arg5[%c0_1, %c0_2] : memref<64x64xf32, #tpu.memory_space<vmem>>, vector<64x64xf32>
    %c0_3 = arith.constant 0 : index
    %c0_4 = arith.constant 0 : index
    %c0_5 = arith.constant 0 : index
    %c0_6 = arith.constant 0 : index
    %c0_7 = arith.constant 0 : index
    %2 = vector.load %arg2[%c0_3, %c0_4, %c0_5, %c0_6, %c0_7] : memref<1x2x1x8x64xf32, #tpu.memory_space<vmem>>, vector<1x2x1x8x64xf32>
    %3 = vector.shape_cast %2 : vector<1x2x1x8x64xf32> to vector<2x8x64xf32>
    %4 = vector.shape_cast %3 : vector<2x8x64xf32> to vector<16x64xf32>
    %c0_8 = arith.constant 0 : index
    %c0_9 = arith.constant 0 : index
    %c0_10 = arith.constant 0 : index
    %c0_11 = arith.constant 0 : index
    %c0_12 = arith.constant 0 : index
    %5 = vector.load %arg3[%c0_8, %c0_9, %c0_10, %c0_11, %c0_12] : memref<1x2x1x8x64xf32, #tpu.memory_space<vmem>>, vector<1x2x1x8x64xf32>
    %6 = vector.shape_cast %5 : vector<1x2x1x8x64xf32> to vector<2x8x64xf32>
    %7 = vector.shape_cast %6 : vector<2x8x64xf32> to vector<16x64xf32>
    %cst = arith.constant dense<0.000000e+00> : vector<16x64xf32>
    %8 = tpu.matmul %4, %0, %cst {dimension_numbers = #tpu.dot_dimension_numbers<[1], [0], [0], [1], [0, 0, 1, 1], [], []>} : vector<16x64xf32>, vector<64x64xf32>, vector<16x64xf32> -> vector<16x64xf32>
    %cst_13 = arith.constant dense<0.000000e+00> : vector<16x64xf32>
    %9 = tpu.matmul %7, %1, %cst_13 {dimension_numbers = #tpu.dot_dimension_numbers<[1], [0], [0], [1], [0, 0, 1, 1], [], []>} : vector<16x64xf32>, vector<64x64xf32>, vector<16x64xf32> -> vector<16x64xf32>
    %10 = arith.addf %8, %9 : vector<16x64xf32>
    %11 = vector.shape_cast %10 : vector<16x64xf32> to vector<2x8x64xf32>
    %c0_14 = arith.constant 0 : index
    %c0_15 = arith.constant 0 : index
    %c0_16 = arith.constant 0 : index
    %c0_17 = arith.constant 0 : index
    %12 = vector.load %arg6[%c0_14, %c0_15, %c0_16, %c0_17] : memref<1x2x8x64xf32, #tpu.memory_space<vmem>>, vector<1x2x8x64xf32>
    %13 = vector.shape_cast %12 : vector<1x2x8x64xf32> to vector<2x8x64xf32>
    %14 = vector.shape_cast %11 : vector<2x8x64xf32> to vector<1x2x8x64xf32>
    tpu.vector_store %arg6[%c0_14, %c0_15, %c0_16, %c0_17], %14 {strides = array<i32>} : memref<1x2x8x64xf32, #tpu.memory_space<vmem>>, vector<1x2x8x64xf32>,
    return
  }
  func.func @transform_0(%arg0: i32, %arg1: i32) -> (i32, i32, i32, i32, i32) {
    %c0_i32 = arith.constant 0 : i32
    %c0_i32_0 = arith.constant 0 : i32
    %c0_i32_1 = arith.constant 0 : i32
    %c0_i32_2 = arith.constant 0 : i32
    return %arg0, %arg1, %c0_i32, %c0_i32_0, %c0_i32_1 : i32, i32, i32, i32, i32
  }
  func.func @transform_1(%arg0: i32, %arg1: i32) -> (i32, i32, i32, i32, i32) {
    %c1_i32 = arith.constant 1 : i32
    %c0_i32 = arith.constant 0 : i32
    %c0_i32_0 = arith.constant 0 : i32
    %c0_i32_1 = arith.constant 0 : i32
    return %arg0, %arg1, %c1_i32, %c0_i32, %c0_i32_0 : i32, i32, i32, i32, i32
  }
  func.func @transform_2(%arg0: i32, %arg1: i32) -> (i32, i32) {
    %c0_i32 = arith.constant 0 : i32
    %c0_i32_0 = arith.constant 0 : i32
    %c0_i32_1 = arith.constant 0 : i32
    return %c0_i32, %c0_i32_0 : i32, i32
  }
  func.func @transform_3(%arg0: i32, %arg1: i32) -> (i32, i32) {
    %c0_i32 = arith.constant 0 : i32
    %c0_i32_0 = arith.constant 0 : i32
    %c0_i32_1 = arith.constant 0 : i32
    return %c0_i32, %c0_i32_0 : i32, i32
  }
  func.func @transform_4(%arg0: i32, %arg1: i32) -> (i32, i32, i32, i32) {
    %c0_i32 = arith.constant 0 : i32
    %c0_i32_0 = arith.constant 0 : i32
    %c0_i32_1 = arith.constant 0 : i32
    return %arg0, %arg1, %c0_i32, %c0_i32_0 : i32, i32, i32, i32
  }
}

</mosaic_0001>

<bundles_post_ra>
// kernel: tpu_custom_call.1
= control target key start
LH: loop header
LB: loop body
LE: loop exit
PB: predicated region body
PF: predicated region fallthrough
CT: control target
= control target key end

     0   :  { %s1199_s0 = inlined_call_operand.hbm [shape: f32[2,8,2,8,64], index: 0, kind: input, shape index: {}]   ;;  %s1200_s1 = inlined_call_operand.hbm [shape: f32[2,8,2,8,64], index: 1, kind: input, shape index: {}]   ;;  %s1201_s2 = inlined_call_operand.hbm [shape: f32[64,64], index: 2, kind: input, shape index: {}]   ;;  %s1202_s3 = inlined_call_operand.hbm [shape: f32[64,64], index: 3, kind: input, shape index: {}]   ;;  %s1203_s4 = inlined_call_operand.hbm [shape: f32[2,8,8,64], index: 4, kind: output, shape index: {}]  }
   0x1   :  { %1216 = sst [smem:[#allocation23_spill]] %s1199_s0 }
   0x2   :  { %1217 = sst [smem:[#allocation24_spill]] %s1201_s2 }
   0x3   :  { %1218 = sst [smem:[#allocation25_spill]] %s1202_s3 }
   0x4   :  { %9 = vsyncpa [#allocation3], 0 }
   0x5   :  { %11 = vsyncpa [#allocation3 + $0x1], 0 }
   0x6   :  { %12 = vsyncpa [#allocation6], 0 }
   0x7   :  { %14 = vsyncpa [#allocation6 + $0x1], 0 }
   0x8   :  { %15 = vsyncpa [#allocation9], 0 }
   0x9   :  { %16 = vsyncpa [#allocation4], 0 }
   0xa   :  { %18 = vsyncpa [#allocation4 + $0x1], 0  ;;  %s977_s15 = smov 0   ;;  %s979_s16 = smov 0  }
   0xb   :  { %s981_s17 = smov 0   ;;  %s983_s18 = smov 0  }
   0xc   :  { %s985_s19 = smov 0   ;;  %s987_s20 = smov 0  }
   0xd   :  { %s989_s21 = smov 0   ;;  %s991_s22 = smov 0  }
   0xe LB: > { %1219 = sst [smem:[#allocation16_spill]] %s915_s15  ;;  %s1018_s23 = sadd.s32 4294967295, %s943_s22   ;;  %s943_s22 = sphi %s991_s22, %s24_s22   ;;  %s939_s21 = sphi %s989_s21, %s1243_s21   ;;  %s935_s20 = sphi %s987_s20, %s1242_s20   ;;  %s931_s19 = sphi %s985_s19, %s1241_s19   ;;  %s927_s18 = sphi %s983_s18, %s1240_s18   ;;  %s923_s17 = sphi %s981_s17, %s1246_s17   ;;  %s919_s16 = sphi %s979_s16, %s1245_s16   ;;  %s915_s15 = sphi %s977_s15, %s1244_s15  }
   0xf   : > { %1220 = sst [smem:[#allocation17_spill]] %s935_s20  ;;  %s557_s24 = sadd.s32 4294967294, %s943_s22  }
  0x10   : > { %1221 = sst [smem:[#allocation18_spill]] %s939_s21  ;;  %p58_p0 = scmp.ne.s32.totalorder %s919_s16, %s915_s15 }
  0x11   : > { %p59_p1 = scmp.eq.s32.totalorder %s1018_s23, 0  ;;  %p154_p2 = scmp.eq.s32.totalorder %s1018_s23, 7 }
  0x12   : > { %p160_p3 = scmp.eq.s32.totalorder %s557_s24, 7  ;;  %p558_p5 = scmp.ge.s32.totalorder %s943_s22, 1 }
  0x13   : > { %p1027_p4 = por %p59_p1, %p58_p0  ;;  %p167_p7 = scmp.lt.s32.totalorder %s943_s22, 9 }
  0x14   : > { %p1032_p6 = por %p160_p3, %p58_p0  ;;  %s1225_s2 = sld [smem:[#allocation24_spill]] }
  0x15   : > { %p1040_p8 = pnand %p558_p5, %p167_p7  ;;  %s945_s5 = smov [#allocation7]  }
  0x16   : > { %s1223_s26 = scalar_select %p1032_p6, 1, 0 }
  0x17   : > { %p618_p9 = pneg %p1040_p8  ;;  %s180_s6 = sshll.u32 %s945_s5, 4  ;;  %s181_s6 = int_to_ptr.vmem [resolvable:$true] %s180_s6 }
  0x18   : > { %1224 = sst [smem:[#allocation19_spill]] %s1223_s26  ;;  %s1204_s10 = smov 128  }
  0x19   : > { %p619_p10 = pnand %p618_p9, %p59_p1  ;;  %s1227_s3 = sld [smem:[#allocation25_spill]] }
  0x1a   : > { %s178_s29 = sshll.u32 %s1225_s2, 4  ;;  %s1206_s11 = smov 8   ;;  %s179_s29 = int_to_ptr.hbm [resolvable:$true] %s178_s29 }
  0x1b   : > { %621 = dma.hbm_to_vmem [thread:$0]  (!%p619_p10), %s179_s29, 1024, %s181_s6, [#allocation6], %s1204_s10, %s1204_s10, %s1206_s11  }
  0x1c   : > { %s948_s12 = smov [#allocation8]   ;;  %s33_s14 = sadd.s32 1, %s935_s20 }
  0x1d   : > { %s194_s13 = sshll.u32 %s948_s12, 4  ;;  %s36_s24 = sadd.s32 1, %s939_s21  ;;  %s195_s13 = int_to_ptr.vmem [resolvable:$true] %s194_s13 }
  0x1e   : > { %p34_p11 = scmp.ge.s32.totalorder %s33_s14, 4  ;;  %s45_s27 = sadd.s32 1, %s923_s17 }
  0x1f   : > { %s192_s9 = sshll.u32 %s1227_s3, 4  ;;  %p52_p12 = scmp.ne.s32.totalorder %s923_s17, %s919_s16  ;;  %s193_s9 = int_to_ptr.hbm [resolvable:$true] %s192_s9 }
  0x20   : > { %624 = dma.hbm_to_vmem [thread:$0]  (!%p619_p10), %s193_s9, 1024, %s195_s13, [#allocation9], %s1204_s10, %s1204_s10, %s1206_s11  }
  0x21   : > { %p53_p13 = scmp.eq.s32.totalorder %s943_s22, 0  ;;  %s1248_s14 = smov (%p34_p11, %s33_s14), 0 }
  0x22   : > { %1228 = sst [smem:[#allocation20_spill]] %s1248_s14  ;;  %s1250_s24 = smov (!%p34_p11, %s36_s24), %s939_s21 }
  0x23   : > { %s41_s28 = ssub.s32 %s935_s20, %s1248_s14  ;;  %p1068_p0 = por %p53_p13, %p52_p12 }
  0x24   : > { %p38_p3 = scmp.ge.s32.totalorder %s1250_s24, 2  ;;  %p1074_p5 = por %p154_p2, %p52_p12 }
  0x25   : > { %p638_p7 = scmp.lt.s32.totalorder %s943_s22, 8  ;;  %s208_s6 = sand.u32 1, %s923_s17  }
  0x26   : > { %s1230_s5 = scalar_select %p1074_p5, 1, 0 }
  0x27   : > { %s1252_s24 = smov (%p38_p3, %s1250_s24), 0  ;;  %s562_s7 = sshll.u32 %s208_s6, 4 }
  0x28   : > { %1231 = sst [smem:[#allocation21_spill]] %s1230_s5  ;;  %s40_s8 = ssub.s32 %s939_s21, %s1252_s24 }
  0x29   : > { %1232 = sst [smem:[#allocation22_spill]] %s1252_s24  ;;  %s42_s9 = sor.u32 %s41_s28, %s40_s8 }
  0x2a   : > { %s587_s12 = sshll.u32 %s935_s20, 2  ;;  %p43_p9 = scmp.eq.s32.totalorder %s42_s9, 0 }
  0x2b   : > { %s565_s13 = sshll.u32 %s939_s21, 4  ;;  %s212_s11 = scalar_lea.vmem [#allocation2], %s562_s7 }
  0x2c   : > { %s218_s10 = sadd.s32 %s587_s12, %s565_s13  ;;  %s223_s2 = sshll.u32 %s212_s11, 4  ;;  %s224_s2 = int_to_ptr.vmem [resolvable:$true] %s223_s2 }
  0x2d   : > { %s1087_s3 = scalar_select %p43_p9, %s923_s17, %s45_s27  }
  0x2e   : > { %s566_s14 = sshll.u32 %s218_s10, 3  ;;  %s1233_s0 = sld [smem:[#allocation23_spill]] }
  0x2f   : > { %p1096_p2 = pnand %p638_p7, %p1068_p0  ;;  %s209_s11 = scalar_lea.sflag [#allocation3], %s208_s6 }
  0x30   : > { %s949_s27 = smov 256   ;;  %s1235_s10 = smov 8  }
  0x31   : > { %s1236_s8 = smov 128   ;;  %s466_s15 = scalar_lea.hbm %s1200_s1, %s566_s14 }
  0x32   : > { %s467_s26 = scalar_lea.hbm %s466_s15, 8  ;;  %s237_s29 = scalar_lea.vmem [#allocation5], %s562_s7 }
  0x33   : > { %s249_s13 = sshll.u32 %s237_s29, 4  ;;  %s233_s21 = sand.u32 1, %s943_s22   ;;  %s250_s13 = int_to_ptr.vmem [resolvable:$true] %s249_s13 }
  0x34   : > { %s220_s5 = scalar_lea.hbm %s1233_s0, %s566_s14  ;;  %s247_s0 = sshll.u32 %s467_s26, 4  ;;  %s248_s0 = int_to_ptr.hbm [resolvable:$true] %s247_s0 }
  0x35   : > { %s221_s28 = sshll.u32 %s220_s5, 4  ;;  %s234_s20 = scalar_lea.sflag [#allocation6], %s233_s21  ;;  %s222_s28 = int_to_ptr.hbm [resolvable:$true] %s221_s28 }
  0x36   : > { %628 = dma.hbm_to_vmem [thread:$0]  (!%p1096_p2), %s222_s28, 256, %s224_s2, %s209_s11, %s949_s27, %s1236_s8, %s1235_s10  }
  0x37   : > { %631 = dma.hbm_to_vmem [thread:$0]  (!%p1096_p2), %s248_s0, 256, %s250_s13, %s234_s20, %s949_s27, %s1236_s8, %s1235_s10  }
  0x38   : > { %261 = sbr.rel (%p1040_p8) target bundleno = 224 (0xe0), region = 36  ;;  %s1115_s2 = sand.u32 (!%p1040_p8), 1, %s919_s16  }
  0x39   : > { %s1118_s14 = sshll.u32 (!%p1040_p8), %s1115_s2, 4  ;;  %s264_s5 = scalar_lea.sflag (!%p1040_p8), [#allocation3], %s1115_s2 }
  0x3a   : > { %s267_s6 = scalar_lea.vmem (!%p1040_p8), [#allocation2], %s1118_s14 }
  0x3d   : > { %894 = dma.done.wait (%p1027_p4), %s264_s5, 256  }
  0x3e   : > { %896 = vsyncadd (%p1027_p4), %s264_s5, 4294967040  ;;  %s273_s0 = sand.u32 1, %s1018_s23   ;;  %s277_s21 = scalar_lea.vmem [#allocation5], %s1118_s14 }
  0x3f   : > { %s274_s20 = scalar_lea.sflag [#allocation6], %s273_s0 }
  0x40   : > { %898 = dma.done.wait (%p1027_p4), %s274_s20, 256  }
  0x41   : > { %900 = vsyncadd (%p1027_p4), %s274_s20, 4294967040 }
  0x42   : > { %902 = dma.done.wait (%p59_p1), [#allocation6], 1024  }
  0x43   : > { %904 = vsyncadd (%p59_p1), [#allocation6], 4294966272 }
  0x44   : > { %906 = dma.done.wait (%p59_p1), [#allocation9], 1024  }
  0x45   : > { %908 = vsyncadd (%p59_p1), [#allocation9], 4294966272  ;;  %v336_v0 = vld [vmem:[#allocation8 + $0x38] sm:$0xff]  ;;  %v335_v2 = vld [vmem:[#allocation8 + $0x30] sm:$0xff]  ;;  %vm341_vm0 = vcmask 523264   ;;  %s582_s23 = sshll.u32 %s927_s18, 1 }
  0x46   : > { %v328_v1 = vld [vmem:[#allocation7 + $0x38] sm:$0xff]  ;;  %588 = vmatpush.msra.mxu2 %v336_v0  ;;  %v327_v3 = vld [vmem:[#allocation7 + $0x30] sm:$0xff]  ;;  %v334_v4 = vld [vmem:[#allocation8 + $0x28] sm:$0xff]  ;;  %356 = vmatpush.msra.mxu0 %v336_v0  ;;  %s583_s25 = sshll.u32 %s931_s19, 3  ;;  %s317_s27 = scalar_lea.vmem [#allocation10], %s1118_s14 }
  0x47   : > { %596 = vmatpush.msra.mxu3 %v328_v1  ;;  %v326_v5 = vld [vmem:[#allocation7 + $0x28] sm:$0xff]  ;;  %385 = vmatpush.msra.mxu1 %v328_v1  ;;  %v333_v6 = vld [vmem:[#allocation8 + $0x20] sm:$0xff]  ;;  %v332_v8 = vld [vmem:[#allocation8 + $0x18] sm:$0xff]  ;;  %s414_s30 = sadd.s32 %s583_s25, %s582_s23  ;;  %s417_s8 = sshll.u32 %s317_s27, 4  ;;  %s418_s8 = int_to_ptr.vmem [resolvable:$true] %s417_s8 }
  0x48   : > { %589 = vmatpush.msra.mxu2 %v335_v2  ;;  %v325_v7 = vld [vmem:[#allocation7 + $0x20] sm:$0xff]  ;;  %357 = vmatpush.msra.mxu0 %v335_v2  ;;  %v324_v9 = vld [vmem:[#allocation7 + $0x18] sm:$0xff]  ;;  %v331_v10 = vld [vmem:[#allocation8 + $0x10] sm:$0xff]  ;;  %s584_s24 = sshll.u32 %s414_s30, 3  ;;  %s403_s18 = scalar_lea.sflag [#allocation4], %s1115_s2 }
  0x49   : > { %597 = vmatpush.msra.mxu3 %v327_v3  ;;  %386 = vmatpush.msra.mxu1 %v327_v3  ;;  %v323_v11 = vld [vmem:[#allocation7 + $0x10] sm:$0xff]  ;;  %v330_v12 = vld [vmem:[#allocation8 + $0x8] sm:$0xff]  ;;  %v329_v14 = vld [vmem:[#allocation8] sm:$0xff]  ;;  %s416_s11 = scalar_lea.hbm %s1203_s4, %s584_s24  ;;  %s853_s29 = scalar_lea.hbm %s1203_s4, 128 }
  0x4a   : > { %590 = vmatpush.msra.mxu2 %v334_v4  ;;  %358 = vmatpush.msra.mxu0 %v334_v4  ;;  %v322_v13 = vld [vmem:[#allocation7 + $0x8] sm:$0xff]  ;;  %v321_v15 = vld [vmem:[#allocation7] sm:$0xff]  ;;  %s419_s9 = sshll.u32 %s416_s11, 4  ;;  %s420_s9 = int_to_ptr.hbm [resolvable:$true] %s419_s9 }
  0x4b   : > { %598 = vmatpush.msra.mxu3 %v326_v5  ;;  %387 = vmatpush.msra.mxu1 %v326_v5  ;;  %v340_v16 = vld [vmem:[%s277_s21 + $0x8] sm:$0xff]  ;;  %v339_v18 = vld [vmem:[%s277_s21] sm:$0xff]  ;;  %s847_s19 = sshra.s32 %s420_s9, 4  ;;  %s848_s19 = int_to_ptr.hbm [resolvable:$true] %s847_s19 }
  0x4c   : > { %591 = vmatpush.msra.mxu2 %v333_v6  ;;  %359 = vmatpush.msra.mxu0 %v333_v6  ;;  %v338_v17 = vld [vmem:[%s267_s6 + $0x8] sm:$0xff]  ;;  %v337_v19 = vld [vmem:[%s267_s6] sm:$0xff]  ;;  %s849_s12 = scalar_lea.hbm %s848_s19, 16  ;;  %p854_p10 = scmp.lt.s32.totalorder %s848_s19, %s1203_s4 }
  0x4d   : > { %599 = vmatpush.msra.mxu3 %v325_v7  ;;  %388 = vmatpush.msra.mxu1 %v325_v7  ;;  %p850_p1 = scmp.ne.s32.totalorder %s848_s19, %s849_s12  ;;  %p855_p11 = scmp.lt.s32.totalorder %s853_s29, %s849_s12 }
  0x4e   : > { %592 = vmatpush.msra.mxu2 %v332_v8  ;;  %360 = vmatpush.msra.mxu0 %v332_v8 }
  0x4f   : > { %600 = vmatpush.msra.mxu3 %v324_v9  ;;  %389 = vmatpush.msra.mxu1 %v324_v9  ;;  %p851_p4 = pnand %p850_p1, %p1074_p5  ;;  %p856_p12 = por %p855_p11, %p854_p10 }
  0x50   : > { %593 = vmatpush.msra.mxu2 %v331_v10  ;;  %361 = vmatpush.msra.mxu0 %v331_v10 }
  0x51   : > { %601 = vmatpush.msra.mxu3 %v323_v11  ;;  %390 = vmatpush.msra.mxu1 %v323_v11  ;;  %p852_p8 = pneg %p851_p4 }
  0x52   : > { %594 = vmatpush.msra.mxu2 %v330_v12  ;;  %362 = vmatpush.msra.mxu0 %v330_v12 }
  0x53   : > { %602 = vmatpush.msra.mxu3 %v322_v13  ;;  %391 = vmatpush.msra.mxu1 %v322_v13  ;;  %p857_p13 = pnand %p856_p12, %p852_p8 }
  0x54   : > { %595 = vmatpush.msra.mxu2 %v329_v14  ;;  %363 = vmatpush.msra.mxu0 %v329_v14 }
  0x55   : > { %603 = vmatpush.msra.mxu3 %v321_v15  ;;  %578 = vmatmul.msk.f32.vlgmr.msra.gmra.mxu2 %vm341_vm0, %v340_v16 }
  0x56   : > { %580 = vmatmul.msk.f32.vlgmr.msra.gmra.mxu3 %vm341_vm0, %v338_v17  ;;  %392 = vmatpush.msra.mxu1 %v321_v15 }
  0x57   : > { %577 = vmatmul.msk.f32.vlgmr.msra.gmra.mxu0 %vm341_vm0, %v339_v18  ;;  %579 = vmatmul.msk.f32.vlgmr.msra.gmra.mxu1 %vm341_vm0, %v337_v19 }
  0xd4   : > { %v365_v20 = vpop.f32.mrf.mxu0  ;;  %v394_v21 = vpop.f32.mrf.mxu1 }
  0xd5   : > { %v395_v22 = vadd.f32 %v394_v21, %v365_v20 }
  0xd7   : > { %400 = vst.msk [vmem:[%s317_s27] sm:$0xff] %vm341_vm0, %v395_v22 }
  0xd8   : > { %v368_v23 = vpop.f32.mrf.mxu2 }
  0xd9   : > { %v397_v24 = vpop.f32.mrf.mxu3 }
  0xda   : > { %v398_v25 = vadd.f32 %v397_v24, %v368_v23 }
  0xdc   : > { %401 = vst.msk [vmem:[%s317_s27 + $0x8] sm:$0xff] %vm341_vm0, %v398_v25 }
  0xdd   : > { %860 = shalt.err (!%p857_p13)
}
  0xde   : > { %s950_s2 = smov 128   ;;  %s951_s5 = smov 8  }
  0xdf   : > { %616 = dma.vmem_to_hbm [thread:$0]  (%p1074_p5), %s418_s8, 256, %s420_s9, %s403_s18, %s950_s2, %s950_s2, %s951_s5  }
  0xe0 PF: > { %s1238_s6 = sld [smem:[#allocation16_spill]]  ;;  %p641_p0 = scmp.ge.s32.totalorder %s943_s22, 2 }
  0xe2   : > { %p633_p3 = pnand %p641_p0, %p1032_p6 }
  0xe4   : > { %p634_p7 = pneg %p633_p3 }
  0xe6   : > { %s434_s20 = sand.u32 1, %s1238_s6  }
  0xe7   : > { %s435_s21 = scalar_lea.sflag [#allocation4], %s434_s20 }
  0xe8   : > { %910 = dma.done.wait (%p634_p7), %s435_s21, 256  }
  0xe9   : > { %912 = vsyncadd (%p634_p7), %s435_s21, 4294967040  ;;  %s24_s22 = sadd.s32 1, %s943_s22   ;;  %s1240_s18 = sld [smem:[#allocation17_spill]] }
  0xea   : > { %p21_p9 = scmp.ge.s32.totalorder %s24_s22, 10   ;;  %s1241_s19 = sld [smem:[#allocation18_spill]] }
  0xeb   : > { %s1242_s20 = sld [smem:[#allocation20_spill]]  ;;  %s1244_s15 = smov %s919_s16 }
  0xec   : > { %s1243_s21 = sld [smem:[#allocation22_spill]]  ;;  %s1245_s16 = smov %s923_s17 }
  0xed   : > { %s1246_s17 = smov %s1087_s3  ;;  %23 = sbr.rel (!%p21_p9) target bundleno = 14 (0xe), region = 102 }
  0xf2   :  { %441 = vsyncpa [#allocation3], 1 }
  0xf3   :  { %443 = vsyncpa [#allocation3 + $0x1], 1 }
  0xf4   :  { %444 = vsyncpa [#allocation6], 1 }
  0xf5   :  { %446 = vsyncpa [#allocation6 + $0x1], 1 }
  0xf6   :  { %447 = vsyncpa [#allocation9], 1 }
  0xf7   :  { %448 = vsyncpa [#allocation4], 1 }
  0xf8   :  { %450 = vsyncpa [#allocation4 + $0x1], 1 }

</bundles_post_ra>
